<compile_context>
chip_gen: v7x
topology: tpu7x:2x2x1
jax: 0.10.0
libtpu: 0.0.40
codegen_flags: <defaults>
</compile_context>

<pallas_src>
import functools

import jax
import jax.numpy as jnp
from jax import lax
from jax.experimental import pallas as pl
from jax.experimental.pallas import tpu as pltpu

_EPS = 1e-10
_LANE = 128
# Per-grid-step HBM->VMEM byte budget for the two streamed inputs combined.
# Both are double-buffered by the pipeline => ~2x this resident in VMEM.
_STEP_INPUT_BYTES = 8 * 1024 * 1024
_VMEM_LIMIT_BYTES = 48 * 1024 * 1024   # fits v7x 64 MiB physical; ample on v5e/v6e

# TODO(synk): pascal_tree_parents / pascal_tree_childs are undefined globals in
# the reference module; a deterministic 4-class synthetic tree stands in here.
PASCAL_TREE_PARENTS = {1: [0], 2: [0], 3: [1]}
PASCAL_TREE_CHILDS = {0: [1, 2], 1: [3]}


# ------------------------------ element math --------------------------------

def _int_pow(x, n):
    if n == 0:
        return jnp.ones_like(x)
    r = x
    for _ in range(n - 1):
        r = r * x
    return r


def _focal_elem(p, g, gamma):
    """Focal term per element: 2 logs always, +2 exps only for float gamma."""
    lp = jnp.log(p + _EPS)
    l1 = jnp.log(1.0 - p + _EPS)
    ig = int(gamma)
    if float(ig) == float(gamma) and 0 <= ig <= 8:
        w_pos = _int_pow(1.0 - p, ig)        # (1-p)^gamma, pure VPU multiplies
        w_neg = _int_pow(p, ig)
    else:
        w_pos = jnp.exp(gamma * l1)          # reuse logs; O(eps) delta
        w_neg = jnp.exp(gamma * lp)
    return -g * (w_pos * lp) - (1.0 - g) * (w_neg * l1)


def _bce_elem(p, g):
    # torch.nn.functional.binary_cross_entropy clamps the log terms at -100.
    log_p = jnp.maximum(jnp.log(p), -100.0)
    log_1mp = jnp.maximum(jnp.log(1.0 - p), -100.0)
    return -(g * log_p + (1.0 - g) * log_1mp)


def _fold_rows(elem, acc_rows):
    """Partial-sum a (rows, L) block down to (acc_rows, L) with VPU adds."""
    rows = elem.shape[0]
    if rows == acc_rows:
        return elem
    out = elem[0:acc_rows]
    for j in range(1, rows // acc_rows):
        out = out + elem[j * acc_rows:(j + 1) * acc_rows]
    return out


# ------------------------- flat-sum kernel (BCE/Focal) -----------------------

def _flat_sum_kernel(p_ref, g_ref, out_ref, acc_ref, *, elem_fn, block_rows,
                     total_rows, blocks_per_part, acc_rows, needs_mask):
    part = pl.program_id(0)
    i = pl.program_id(1)

    @pl.when(i == 0)
    def _():
        acc_ref[...] = jnp.zeros_like(acc_ref)

    p = p_ref[...].astype(jnp.float32)
    g = g_ref[...].astype(jnp.float32)

    if not needs_mask:
        acc_ref[...] += _fold_rows(elem_fn(p, g), acc_rows)
    else:
        g_blk = part * blocks_per_part + i
        clean = (g_blk + 1) * block_rows <= total_rows

        @pl.when(clean)
        def _():
            acc_ref[...] += _fold_rows(elem_fn(p, g), acc_rows)

        @pl.when(jnp.logical_not(clean))
        def _():
            row = lax.broadcasted_iota(jnp.int32, (block_rows, 1), 0)
            valid = (g_blk * block_rows + row) < total_rows
            # Clamp garbage rows before the transcendentals, then zero them.
            pm = jnp.where(valid, p, 0.5)
            gm = jnp.where(valid, g, 0.0)
            elem = jnp.where(valid, elem_fn(pm, gm), 0.0)
            acc_ref[...] += _fold_rows(elem, acc_rows)

    @pl.when(i == pl.num_programs(1) - 1)
    def _():
        out_ref[0, 0] = jnp.sum(acc_ref[...])


# --------------------------- fused FocalTree kernel --------------------------

def _focal_tree_kernel(p_ref, g_ref, out_ref, acc_ref, *, gamma, parents,
                       childs, n_ch, tile_r, total_r, acc_rows, needs_mask):
    r = pl.program_id(1)

    @pl.when(r == 0)
    def _():
        acc_ref[...] = jnp.zeros_like(acc_ref)

    p_all = p_ref[...].astype(jnp.float32)   # (C, tile_r, L)
    g_all = g_ref[...].astype(jnp.float32)

    def tree_elem(pa, ga):
        elem = None
        for c in range(n_ch):                 # static unroll over tiny C
            pc = pa[c]
            gc = ga[c]
            if c in parents:
                pp = pc
                for par in parents[c]:
                    pp = jnp.minimum(pp, pa[par])
            else:
                pp = jnp.zeros_like(pc)       # reference zero-fills missing nodes
            if c in childs:
                pm = pc
                for ch in childs[c]:
                    pm = jnp.maximum(pm, pa[ch])
            else:
                pm = jnp.zeros_like(pc)
            pv = gc * pp + (1.0 - gc) * pm
            term = _focal_elem(pv, gc, gamma)
            elem = term if elem is None else elem + term
        return elem

    if not needs_mask:
        acc_ref[...] += _fold_rows(tree_elem(p_all, g_all), acc_rows)
    else:
        clean = (r + 1) * tile_r <= total_r

        @pl.when(clean)
        def _():
            acc_ref[...] += _fold_rows(tree_elem(p_all, g_all), acc_rows)

        @pl.when(jnp.logical_not(clean))
        def _():
            row = lax.broadcasted_iota(jnp.int32, (1, tile_r, 1), 1)
            valid3 = (r * tile_r + row) < total_r
            pa = jnp.where(valid3, p_all, 0.5)
            ga = jnp.where(valid3, g_all, 0.0)
            elem = jnp.where(valid3[0], tree_elem(pa, ga), 0.0)
            acc_ref[...] += _fold_rows(elem, acc_rows)

    @pl.when(r == pl.num_programs(1) - 1)
    def _():
        out_ref[0, 0] = jnp.sum(acc_ref[...])


# ------------------------------- glue helpers --------------------------------

def _to_slab(x):
    """2-D lane-dense view; no host-side copy, no dtype cast, no padding."""
    n = x.size
    if n % _LANE == 0:
        return jnp.reshape(x, (n // _LANE, _LANE))
    # Ragged lane count: keep the natural trailing dim (full-dim block).
    return jnp.reshape(x, (-1, x.shape[-1]))


def _pick_block_rows(rows, bytes_per_row_pair):
    budget = max(8, (_STEP_INPUT_BYTES // max(bytes_per_row_pair, 1) // 8) * 8)
    if rows <= budget:
        return rows            # full-dim block; no masking, no ragged tail
    return budget              # multiple of 8


def _pick_acc_rows(block_rows):
    if block_rows % 256 == 0:
        return 256
    if block_rows % 8 == 0:
        return 8
    return block_rows


def _run_flat_sum(elem_fn, pred, gt):
    p_slab = _to_slab(pred)
    g_slab = _to_slab(gt)
    rows, lane = p_slab.shape
    bytes_pair = lane * (p_slab.dtype.itemsize + g_slab.dtype.itemsize)
    block_rows = _pick_block_rows(rows, bytes_pair)
    total_blocks = pl.cdiv(rows, block_rows)
    num_parts = 2 if total_blocks >= 2 else 1     # dual-TC partial sums (v7x)
    blocks_per_part = pl.cdiv(total_blocks, num_parts)
    covered = num_parts * blocks_per_part * block_rows
    needs_mask = covered != rows
    acc_rows = _pick_acc_rows(block_rows)

    kernel = functools.partial(
        _flat_sum_kernel, elem_fn=elem_fn, block_rows=block_rows,
        total_rows=rows, blocks_per_part=blocks_per_part,
        acc_rows=acc_rows, needs_mask=needs_mask)

    def in_map(p, i):
        g_blk = p * blocks_per_part + i
        return (jnp.minimum(g_blk, total_blocks - 1), 0)   # never fully OOB

    partials = pl.pallas_call(
        kernel,
        out_shape=jax.ShapeDtypeStruct((num_parts, 1), jnp.float32),
        grid_spec=pltpu.PrefetchScalarGridSpec(
            num_scalar_prefetch=0,
            grid=(num_parts, blocks_per_part),
            in_specs=[pl.BlockSpec((block_rows, lane), in_map)] * 2,
            out_specs=pl.BlockSpec((1, 1), lambda p, i: (p, 0),
                                   memory_space=pltpu.SMEM),
            scratch_shapes=[pltpu.VMEM((acc_rows, lane), jnp.float32)],
        ),
        compiler_params=pltpu.CompilerParams(
            dimension_semantics=("parallel", "arbitrary"),
            vmem_limit_bytes=_VMEM_LIMIT_BYTES),
    )(p_slab, g_slab)
    return jnp.sum(partials)


# --------------------------------- LossFunc ----------------------------------

class LossFunc:
    def __init__(self, config):
        self.loss_name = config['criterion']
        if self.loss_name not in ['BCE', 'FocalLoss', 'FocalTreeLoss']:
            raise ValueError('Not implemented Loss')
        self.gamma = float(config['gamma']) if 'Focal' in self.loss_name else None
        self.config = config

    def __call__(self, prediction, gt):
        return getattr(self, self.loss_name)(prediction, gt)

    # torch.nn.functional.binary_cross_entropy(pred, gt) * 10  (mean reduction)
    def BCE(self, prediction, gt):
        total = _run_flat_sum(_bce_elem, prediction, gt)
        return total / float(prediction.size) * 10.0

    # (-gt*(1-p)^g*log(p+eps) - (1-gt)*p^g*log(1-p+eps)).sum(1).mean()
    def FocalLoss(self, prediction, gt):
        elem_fn = functools.partial(_focal_elem, gamma=self.gamma)
        total = _run_flat_sum(elem_fn, prediction, gt)
        C = prediction.shape[1]
        return total * (float(C) / float(prediction.size))

    # Plain-JAX version kept for API parity / fallback path.
    def compute_p_scores_indexes(self, scores, tree_parents, tree_childs):
        p_plus = jnp.zeros_like(scores)
        p_minus = jnp.zeros_like(scores)
        for node, parents in tree_parents.items():
            idx = jnp.asarray([node] + list(parents))
            p_plus = p_plus.at[:, node].set(jnp.min(scores[:, idx], axis=1))
        for node, childs in tree_childs.items():
            idx = jnp.asarray([node] + list(childs))
            p_minus = p_minus.at[:, node].set(jnp.max(scores[:, idx], axis=1))
        return p_plus, p_minus

    def FocalTreeLoss(self, prediction, gt):
        B, C, H, W = prediction.shape
        HW = H * W
        nodes = set(PASCAL_TREE_PARENTS) | set(PASCAL_TREE_CHILDS)
        for v in PASCAL_TREE_PARENTS.values():
            nodes.update(v)
        for v in PASCAL_TREE_CHILDS.values():
            nodes.update(v)
        if max(nodes) >= C:
            # Tree references channels the tensor doesn't have: JAX fallback.
            p_plus, p_minus = self.compute_p_scores_indexes(
                prediction, PASCAL_TREE_PARENTS, PASCAL_TREE_CHILDS)
            pv = gt * p_plus + (1.0 - gt) * p_minus
            return self.FocalLoss(pv, gt)

        # Shape-agnostic fused path: lane-dense view if H*W is 128-aligned,
        # otherwise the natural (H, W) trailing dims (full-dim last block).
        if HW % _LANE == 0:
            R, L = HW // _LANE, _LANE
        else:
            R, L = H, W
        pred4 = jnp.reshape(prediction, (B, C, R, L))
        gt4 = jnp.reshape(gt, (B, C, R, L))
        bytes_pair = C * L * (pred4.dtype.itemsize + gt4.dtype.itemsize)
        tile_r = _pick_block_rows(R, bytes_pair)
        nr = pl.cdiv(R, tile_r)
        needs_mask = (nr * tile_r != R)
        acc_rows = _pick_acc_rows(tile_r)

        kernel = functools.partial(
            _focal_tree_kernel, gamma=self.gamma,
            parents=PASCAL_TREE_PARENTS, childs=PASCAL_TREE_CHILDS,
            n_ch=C, tile_r=tile_r, total_r=R, acc_rows=acc_rows,
            needs_mask=needs_mask)

        partials = pl.pallas_call(
            kernel,
            out_shape=jax.ShapeDtypeStruct((B, 1), jnp.float32),
            grid_spec=pltpu.PrefetchScalarGridSpec(
                num_scalar_prefetch=0,
                grid=(B, nr),
                in_specs=[pl.BlockSpec((pl.Squeezed(), C, tile_r, L),
                                       lambda b, r: (b, 0, r, 0))] * 2,
                out_specs=pl.BlockSpec((1, 1), lambda b, r: (b, 0),
                                       memory_space=pltpu.SMEM),
                scratch_shapes=[pltpu.VMEM((acc_rows, L), jnp.float32)],
            ),
            compiler_params=pltpu.CompilerParams(
                dimension_semantics=("parallel", "arbitrary"),
                vmem_limit_bytes=_VMEM_LIMIT_BYTES),
        )(pred4, gt4)
        return jnp.sum(partials) / float(B * H * W)


# ----------------------------------- main ------------------------------------

if __name__ == "__main__":
    key = jax.random.PRNGKey(0)
    k1, k2 = jax.random.split(key)
    B, C, H, W = 2, 4, 16, 16  # C=4 matches the synthetic class tree
    prediction = jax.random.uniform(
        k1, (B, C, H, W), jnp.float32, minval=1e-4, maxval=1.0 - 1e-4)
    gt = (jax.random.uniform(k2, (B, C, H, W)) > 0.5).astype(jnp.float32)

    results = {}
    for crit in ["BCE", "FocalLoss", "FocalTreeLoss"]:
        cfg = {"criterion": crit, "gamma": 2.0, "device": "tpu"}
        loss_fn = LossFunc(cfg)
        results[crit] = jax.block_until_ready(loss_fn(prediction, gt))

    # Plain-JAX reference (same formulas as the torch module) for sanity.
    def ref_bce(p, g):
        lp = jnp.maximum(jnp.log(p), -100.0)
        l1 = jnp.maximum(jnp.log(1.0 - p), -100.0)
        return jnp.mean(-(g * lp + (1.0 - g) * l1)) * 10.0

    def ref_focal(p, g, gamma):
        lp = jnp.power(1.0 - p, gamma) * jnp.log(p + _EPS)
        li = jnp.power(p, gamma) * jnp.log(1.0 - p + _EPS)
        return jnp.sum(-g * lp - (1.0 - g) * li, axis=1).mean()

    helper = LossFunc({"criterion": "FocalTreeLoss", "gamma": 2.0, "device": "tpu"})
    pp, pm = helper.compute_p_scores_indexes(
        prediction, PASCAL_TREE_PARENTS, PASCAL_TREE_CHILDS)
    pv = gt * pp + (1.0 - gt) * pm
    ref = {"BCE": ref_bce(prediction, gt),
           "FocalLoss": ref_focal(prediction, gt, 2.0),
           "FocalTreeLoss": ref_focal(pv, gt, 2.0)}

    for crit in results:
        a = float(results[crit])
        b = float(ref[crit])
        assert abs(a - b) <= 1e-3 * (1.0 + abs(b)), (crit, a, b)

    print("KERNEL_OK")
</pallas_src>

<mosaic_0001>
module attributes {stable_mosaic.version = 11 : i64} {
  func.func @_flat_sum_kernel(%arg0: i32, %arg1: i32, %arg2: memref<16x128xf32, #tpu.memory_space<vmem>>, %arg3: memref<16x128xf32, #tpu.memory_space<vmem>>, %arg4: memref<1x1xf32, #tpu.memory_space<smem>>, %arg5: memref<8x128xf32, #tpu.memory_space<vmem>>) attributes {dimension_semantics = [#tpu.dimension_semantics<parallel>, #tpu.dimension_semantics<arbitrary>], iteration_bounds = array<i64: 1, 1>, scalar_prefetch = 0 : i64, scratch_operands = 1 : i64, tpu.core_type = #tpu.core_type<tc>, window_params = [{transform_indices = @transform_0, window_bounds = array<i64: 16, 128>}, {transform_indices = @transform_1, window_bounds = array<i64: 16, 128>}, {transform_indices = @transform_2, window_bounds = array<i64: 1, 1>}]} {
    %c0_i32 = arith.constant 0 : i32
    %0 = arith.cmpi eq, %arg1, %c0_i32 : i32
    %1 = arith.extui %0 : i1 to i32
    %c0_i32_0 = arith.constant 0 : i32
    %2 = arith.cmpi ne, %1, %c0_i32_0 : i32
    scf.if %2 {
      %cst_14 = arith.constant 0.000000e+00 : f32
      %29 = vector.broadcast %cst_14 : f32 to vector<8x128xf32>
      %c0_15 = arith.constant 0 : index
      %c0_16 = arith.constant 0 : index
      %30 = vector.load %arg5[%c0_15, %c0_16] : memref<8x128xf32, #tpu.memory_space<vmem>>, vector<8x128xf32>
      tpu.vector_store %arg5[%c0_15, %c0_16], %29 {strides = array<i32>} : memref<8x128xf32, #tpu.memory_space<vmem>>, vector<8x128xf32>,
    } else {
    }
    %c0 = arith.constant 0 : index
    %c0_1 = arith.constant 0 : index
    %3 = vector.load %arg2[%c0, %c0_1] : memref<16x128xf32, #tpu.memory_space<vmem>>, vector<16x128xf32>
    %c0_2 = arith.constant 0 : index
    %c0_3 = arith.constant 0 : index
    %4 = vector.load %arg3[%c0_2, %c0_3] : memref<16x128xf32, #tpu.memory_space<vmem>>, vector<16x128xf32>
    %c0_4 = arith.constant 0 : index
    %c0_5 = arith.constant 0 : index
    %5 = vector.load %arg5[%c0_4, %c0_5] : memref<8x128xf32, #tpu.memory_space<vmem>>, vector<8x128xf32>
    %6 = math.log %3 : vector<16x128xf32>
    %cst = arith.constant -1.000000e+02 : f32
    %7 = vector.broadcast %cst : f32 to vector<16x128xf32>
    %8 = arith.maximumf %6, %7 : vector<16x128xf32>
    %cst_6 = arith.constant 1.000000e+00 : f32
    %9 = vector.broadcast %cst_6 : f32 to vector<16x128xf32>
    %10 = arith.subf %9, %3 : vector<16x128xf32>
    %11 = math.log %10 : vector<16x128xf32>
    %cst_7 = arith.constant -1.000000e+02 : f32
    %12 = vector.broadcast %cst_7 : f32 to vector<16x128xf32>
    %13 = arith.maximumf %11, %12 : vector<16x128xf32>
    %14 = arith.mulf %4, %8 : vector<16x128xf32>
    %cst_8 = arith.constant 1.000000e+00 : f32
    %15 = vector.broadcast %cst_8 : f32 to vector<16x128xf32>
    %16 = arith.subf %15, %4 : vector<16x128xf32>
    %17 = arith.mulf %16, %13 : vector<16x128xf32>
    %18 = arith.addf %14, %17 : vector<16x128xf32>
    %cst_9 = arith.constant 0.000000e+00 : f32
    %19 = vector.broadcast %cst_9 : f32 to vector<16x128xf32>
    %20 = arith.subf %19, %18 : vector<16x128xf32>
    %21 = vector.extract_strided_slice %20 {offsets = [0, 0], sizes = [8, 128], strides = [1, 1]} : vector<16x128xf32> to vector<8x128xf32>
    %22 = vector.extract_strided_slice %20 {offsets = [8, 0], sizes = [8, 128], strides = [1, 1]} : vector<16x128xf32> to vector<8x128xf32>
    %23 = arith.addf %21, %22 : vector<8x128xf32>
    %24 = arith.addf %5, %23 : vector<8x128xf32>
    %c0_10 = arith.constant 0 : index
    %c0_11 = arith.constant 0 : index
    %25 = vector.load %arg5[%c0_10, %c0_11] : memref<8x128xf32, #tpu.memory_space<vmem>>, vector<8x128xf32>
    tpu.vector_store %arg5[%c0_10, %c0_11], %24 {strides = array<i32>} : memref<8x128xf32, #tpu.memory_space<vmem>>, vector<8x128xf32>,
    %c0_i32_12 = arith.constant 0 : i32
    %26 = arith.cmpi eq, %arg1, %c0_i32_12 : i32
    %27 = arith.extui %26 : i1 to i32
    %c0_i32_13 = arith.constant 0 : i32
    %28 = arith.cmpi ne, %27, %c0_i32_13 : i32
    scf.if %28 {
      %c0_14 = arith.constant 0 : index
      %c0_15 = arith.constant 0 : index
      %29 = vector.load %arg5[%c0_14, %c0_15] : memref<8x128xf32, #tpu.memory_space<vmem>>, vector<8x128xf32>
      %30 = vector.shape_cast %29 : vector<8x128xf32> to vector<1x8x128xf32>
      %cst_16 = arith.constant dense<0.000000e+00> : vector<1xf32>
      %31 = vector.multi_reduction <add>, %30, %cst_16 [1, 2] : vector<1x8x128xf32> to vector<1xf32>
      %32 = vector.shape_cast %31 : vector<1xf32> to vector<1x1x1xf32>
      %33 = vector.extract %32[0, 0, 0] : f32 from vector<1x1x1xf32>
      %c0_17 = arith.constant 0 : index
      %c0_18 = arith.constant 0 : index
      %34 = memref.load %arg4[%c0_17, %c0_18] : memref<1x1xf32, #tpu.memory_space<smem>>
      memref.store %33, %arg4[%c0_17, %c0_18] : memref<1x1xf32, #tpu.memory_space<smem>>
    } else {
    }
    return
  }
  func.func @transform_0(%arg0: i32, %arg1: i32) -> (i32, i32) {
    %c1_i32 = arith.constant 1 : i32
    %0 = arith.muli %arg0, %c1_i32 : i32
    %1 = arith.addi %0, %arg1 : i32
    %c0_i32 = arith.constant 0 : i32
    %2 = arith.minsi %1, %c0_i32 : i32
    %c0_i32_0 = arith.constant 0 : i32
    %c0_i32_1 = arith.constant 0 : i32
    return %2, %c0_i32_0 : i32, i32
  }
  func.func @transform_1(%arg0: i32, %arg1: i32) -> (i32, i32) {
    %c1_i32 = arith.constant 1 : i32
    %0 = arith.muli %arg0, %c1_i32 : i32
    %1 = arith.addi %0, %arg1 : i32
    %c0_i32 = arith.constant 0 : i32
    %2 = arith.minsi %1, %c0_i32 : i32
    %c0_i32_0 = arith.constant 0 : i32
    %c0_i32_1 = arith.constant 0 : i32
    return %2, %c0_i32_0 : i32, i32
  }
  func.func @transform_2(%arg0: i32, %arg1: i32) -> (i32, i32) {
    %c0_i32 = arith.constant 0 : i32
    %c0_i32_0 = arith.constant 0 : i32
    return %arg0, %c0_i32 : i32, i32
  }
}

</mosaic_0001>

<bundles_post_ra>
// kernel: tpu_custom_call.1
= control target key start
LH: loop header
LB: loop body
LE: loop exit
PB: predicated region body
PF: predicated region fallthrough
CT: control target
= control target key end

     0   :  { %7 = vsyncpa [#allocation4], 0  ;;  %s262_s0 = inlined_call_operand.hbm [shape: f32[16,128], index: 0, kind: input, shape index: {}]   ;;  %s263_s1 = inlined_call_operand.hbm [shape: f32[16,128], index: 1, kind: input, shape index: {}]   ;;  %s264_s2 = inlined_call_operand.hbm [shape: f32[1,1], index: 2, kind: output, shape index: {}]  }
   0x1   :  { %8 = vsyncpa [#allocation7], 0 }
   0x2   :  { %9 = vsyncpa [#allocation5], 0  ;;  %s206_s9 = smov [#allocation3]   ;;  %s146_s13 = scalar_lea.hbm %s262_s0, 256 }
   0x3   :  { %s21_s10 = sshll.u32 %s206_s9, 4  ;;  %p147_p0 = scmp.ne.s32.totalorder %s262_s0, %s146_s13  ;;  %s22_s10 = int_to_ptr.vmem [resolvable:$true] %s21_s10 }
   0x4   :  { %p150_p1 = scmp.lt.u32.totalorder %s146_s13, %s262_s0 }
   0x6   :  { %p152_p2 = pnand %p150_p1, %p147_p0 }
   0x8   :  { %155 = shalt.err (!%p152_p2)
}
   0x9   :  { %s156_s18 = scalar_lea.vmem %s22_s10, 256  ;;  %p161_p4 = scmp.lt.s32.totalorder %s22_s10, %s22_s10 }
   0xa   :  { %p157_p3 = scmp.ne.s32.totalorder %s22_s10, %s156_s18  ;;  %p162_p5 = scmp.lt.s32.totalorder %s156_s18, %s156_s18 }
   0xc   :  { %p163_p6 = por %p162_p5, %p161_p4 }
   0xe   :  { %p164_p7 = pnand %p163_p6, %p157_p3 }
  0x10   :  { %167 = shalt.err (!%p164_p7)
}
  0x11   :  { %s207_s19 = smov 128   ;;  %s208_s20 = smov 8  }
  0x12   :  { %27 = dma.hbm_to_vmem [thread:$0]  %s262_s0, 256, %s22_s10, [#allocation4], %s207_s19, %s207_s19, %s208_s20  }
  0x13   :  { %s209_s23 = smov [#allocation6]   ;;  %s168_s27 = scalar_lea.hbm %s263_s1, 256 }
  0x14   :  { %s39_s24 = sshll.u32 %s209_s23, 4  ;;  %p169_p8 = scmp.ne.s32.totalorder %s263_s1, %s168_s27  ;;  %s40_s24 = int_to_ptr.vmem [resolvable:$true] %s39_s24 }
  0x15   :  { %p172_p9 = scmp.lt.u32.totalorder %s168_s27, %s263_s1 }
  0x17   :  { %p174_p10 = pnand %p172_p9, %p169_p8 }
  0x19   :  { %177 = shalt.err (!%p174_p10)
}
  0x1a   :  { %s178_s4 = scalar_lea.vmem %s40_s24, 256  ;;  %p183_p12 = scmp.lt.s32.totalorder %s40_s24, %s40_s24 }
  0x1b   :  { %p179_p11 = scmp.ne.s32.totalorder %s40_s24, %s178_s4  ;;  %p184_p13 = scmp.lt.s32.totalorder %s178_s4, %s178_s4 }
  0x1d   :  { %p185_p0 = por %p184_p13, %p183_p12 }
  0x1f   :  { %p186_p1 = pnand %p185_p0, %p179_p11 }
  0x21   :  { %189 = shalt.err (!%p186_p1)
}
  0x22   :  { %45 = dma.hbm_to_vmem [thread:$0]  %s263_s1, 256, %s40_s24, [#allocation7], %s207_s19, %s207_s19, %s208_s20  }
  0x23   :  { %200 = dma.done.wait [#allocation4], 256  }
  0x24   :  { %201 = vsyncadd [#allocation4], 4294967040 }
  0x25   :  { %202 = dma.done.wait [#allocation7], 256  }
  0x26   :  { %203 = vsyncadd [#allocation7], 4294967040  ;;  %v65_v0 = vld [vmem:[#allocation3] sm:$0xff]  ;;  %v66_v1 = vld [vmem:[#allocation3 + $0x8] sm:$0xff]  ;;  %s190_s8 = scalar_lea.hbm %s264_s2, 16 }
  0x27   :  { %138 = vlog2.f32 %v65_v0  ;;  %v76_v2 = vsub.f32 1.0, %v65_v0  ;;  %v77_v3 = vsub.f32 1.0, %v66_v1  ;;  %v67_v5 = vld [vmem:[#allocation6] sm:$0xff]  ;;  %v68_v7 = vld [vmem:[#allocation6 + $0x8] sm:$0xff]  ;;  %p191_p2 = scmp.ne.s32.totalorder %s264_s2, %s190_s8  ;;  %p194_p3 = scmp.lt.u32.totalorder %s190_s8, %s264_s2 }
  0x28   :  { %140 = vlog2.f32 %v66_v1  ;;  %v86_v14 = vsub.f32 1.0, %v67_v5  ;;  %v87_v17 = vsub.f32 1.0, %v68_v7 }
  0x29   :  { %142 = vlog2.f32 %v76_v2  ;;  %p196_p4 = pnand %p194_p3, %p191_p2 }
  0x2a   :  { %144 = vlog2.f32 %v77_v3 }
  0x31   :  { %v139_v4 = vpop.eup %138 }
  0x32   :  { %v141_v6 = vpop.eup %140  ;;  %v71_v8 = vmul.f32 0.6931472, %v139_v4 }
  0x33   :  { %v143_v9 = vpop.eup %142  ;;  %v73_v10 = vmul.f32 0.6931472, %v141_v6 }
  0x34   :  { %v145_v11 = vpop.eup %144  ;;  %v74_v12 = vmax.f32 %v71_v8, -100.0  ;;  %v79_v13 = vmul.f32 0.6931472, %v143_v9 }
  0x35   :  { %v75_v15 = vmax.f32 %v73_v10, -100.0  ;;  %v81_v16 = vmul.f32 0.6931472, %v145_v11 }
  0x36   :  { %v82_v18 = vmax.f32 %v79_v13, -100.0  ;;  %v84_v19 = vmul.f32 %v74_v12, %v67_v5 }
  0x37   :  { %v83_v20 = vmax.f32 %v81_v16, -100.0  ;;  %v85_v21 = vmul.f32 %v75_v15, %v68_v7 }
  0x38   :  { %v88_v22 = vmul.f32 %v86_v14, %v82_v18 }
  0x39   :  { %v89_v23 = vmul.f32 %v87_v17, %v83_v20 }
  0x3a   :  { %v90_v24 = vadd.f32 %v88_v22, %v84_v19 }
  0x3b   :  { %v91_v25 = vadd.f32 %v89_v23, %v85_v21 }
  0x3c   :  { %v92_v26 = vsub.f32 0.0, %v90_v24 }
  0x3d   :  { %v93_v27 = vsub.f32 0.0, %v91_v25 }
  0x3f   :  { %v94_v28 = vadd.f32 %v93_v27, %v92_v26 }
  0x41   :  { %101 = vadd.xlane.f32.xlu0 %v94_v28 }
  0xce   :  { %v102_v29 = vpop.xlane.xlu0 %101 }
  0xcf   :  { %v103_v30 = vrot.slane %v102_v29, 4 }
  0xd1   :  { %v104_v31 = vadd.f32 %v103_v30, %v102_v29 }
  0xd3   :  { %v105_v32 = vrot.slane %v104_v31, 2 }
  0xd5   :  { %v106_v33 = vadd.f32 %v105_v32, %v104_v31 }
  0xd7   :  { %v107_v34 = vrot.slane %v106_v33, 1 }
  0xd9   :  { %v108_v35 = vadd.f32 %v107_v34, %v106_v33 }
  0xdb   :  { %131 = vpush %v108_v35 }
 0x10c   :  { %s132_s1 = spop %131 }
 0x10d   :  { %111 = sst [smem:[#allocation8]] %s132_s1 }
 0x10e   :  { %199 = shalt.err (!%p196_p4)
}
 0x10f   :  { %s210_s13 = smov [#allocation8]  }
 0x110   :  { %119 = dma.smem_to_hbm %s210_s13, 16, %s264_s2, [#allocation5]  }
 0x111   :  { %204 = dma.done.wait [#allocation5], 16  }
 0x112   :  { %205 = vsyncadd [#allocation5], 4294967280 }
 0x113   :  { %123 = sfence }
 0x114   :  { %124 = vsyncpa [#allocation4], 1 }
 0x115   :  { %125 = vsyncpa [#allocation7], 1 }
 0x116   :  { %126 = vsyncpa [#allocation5], 1 }

</bundles_post_ra>
